<compile_context>
chip_gen: v7x
topology: tpu7x:2x2x1
jax: 0.10.0
libtpu: 0.0.40
codegen_flags: <defaults>
</compile_context>

<pallas_src>
import functools
import math

import jax
import jax.numpy as jnp
from jax import lax
from jax.experimental import pallas as pl
from jax.experimental.pallas import tpu as pltpu


def _round_up(x, m):
    return ((x + m - 1) // m) * m


def _conv_out_hw(H, W, K, stride, padding, dilation=1):
    Ho = (H + 2 * padding - dilation * (K - 1) - 1) // stride + 1
    Wo = (W + 2 * padding - dilation * (K - 1) - 1) // stride + 1
    return Ho, Wo


def _tpu_vmem_capacity_bytes():
    # Generation-aware physical VMEM (128 MiB v5e/v6e, 64 MiB v7x).
    try:
        info = pltpu.get_tpu_info()
        cap = int(getattr(info, "vmem_capacity_bytes", 0))
        if cap > 0:
            return cap
    except Exception:
        pass
    return 64 * 1024 * 1024      # conservative fallback (v7x-sized)


def _vmem_limit(per_step_bytes, cap_bytes):
    lo = 32 * 1024 * 1024
    hi = max(int(cap_bytes * 3 // 4), lo)     # ~48 MiB on v7x, ~96 MiB on v5e/v6e
    return int(min(max(per_step_bytes + 8 * 1024 * 1024, lo), hi))


# ----------------------------------------------------------------------------
# Kernel 1: conv-as-GEMM per HW tile + lane-dense GroupNorm partial sums.
# grid = (N, n_chunks, tiles_per_chunk)
# ----------------------------------------------------------------------------
def _dcn_gemm_stats_kernel(cols_ref, w_ref, y_ref, sum_ref, sq_ref):
    # cols_ref: (1, Kpad, T)        bf16 deformable im2col columns (zero padded)
    # w_ref:    (Cpad, Kpad)        bf16 flattened conv weight (zero padded)
    # y_ref:    (1, Cpad, T)        bf16 pre-norm conv output tile
    # sum_ref:  (1, 1, Cpad, 128)   f32 lane-dense partial sums  (revisited over t)
    # sq_ref:   (1, 1, Cpad, 128)   f32 lane-dense partial sumsq (revisited over t)
    t = pl.program_id(2)

    @pl.when(t == 0)
    def _():
        sum_ref[...] = jnp.zeros_like(sum_ref)
        sq_ref[...] = jnp.zeros_like(sq_ref)

    y = jnp.dot(w_ref[...], cols_ref[0], preferred_element_type=jnp.float32)
    y_ref[0] = y.astype(y_ref.dtype)          # bf16 intermediate (halves HBM bytes)

    cpad, tile = y.shape
    s = jnp.zeros((cpad, 128), jnp.float32)
    q = jnp.zeros((cpad, 128), jnp.float32)
    # Pure VPU adds over 128-lane-aligned slices: no cross-lane XLU reduce and
    # no masked 1-lane stores on the per-step critical path.
    for g in range(tile // 128):
        blk = y[:, g * 128:(g + 1) * 128]
        s = s + blk
        q = q + blk * blk
    sum_ref[0, 0] = sum_ref[0, 0] + s
    sq_ref[0, 0] = sq_ref[0, 0] + q


# ----------------------------------------------------------------------------
# Kernel 2: fused GroupNorm scale/shift + ReLU, streaming over large HW tiles,
# writing directly to the exact (N, C_out, HW) output.
# ----------------------------------------------------------------------------
def _gn_relu_kernel(y_ref, ss_ref, o_ref):
    # y_ref:  (1, Cpad, T2) bf16 pre-norm activations
    # ss_ref: (1, Cpad, 2)  f32 fused affine: [:, 0]=scale, [:, 1]=shift
    # o_ref:  (1, C_out, T2) output dtype
    ss = ss_ref[0]
    scale = ss[:, 0:1]
    shift = ss[:, 1:2]
    res = jnp.maximum(y_ref[0].astype(jnp.float32) * scale + shift, 0.0)
    o_ref[0] = res[:o_ref.shape[1]].astype(o_ref.dtype)


# ----------------------------------------------------------------------------
# Glue: deformable im2col (bilinear sampling with learned offsets), plain JAX.
# Matches mmcv deform_conv im2col edge handling (per-corner zero outside).
# Optionally emits the columns already in `out_dtype` and padded to
# (k_pad_to, hw_pad_to) so XLA materializes a single (bf16) cols array.
# ----------------------------------------------------------------------------
def deform_im2col(x, offset, kernel_size, stride, padding, dilation=1,
                  out_dtype=None, k_pad_to=None, hw_pad_to=None):
    N, C, H, W = x.shape
    K = kernel_size
    KK = K * K
    Ho, Wo = _conv_out_hw(H, W, K, stride, padding, dilation)

    off = offset.reshape(N, KK, 2, Ho, Wo)
    dy, dx = off[:, :, 0], off[:, :, 1]            # mmcv layout: (dy, dx) per tap

    kh = (jnp.arange(KK) // K).astype(x.dtype) * dilation
    kw = (jnp.arange(KK) % K).astype(x.dtype) * dilation
    base_y = (jnp.arange(Ho) * stride - padding).astype(x.dtype)
    base_x = (jnp.arange(Wo) * stride - padding).astype(x.dtype)

    py = base_y[None, None, :, None] + kh[None, :, None, None] + dy    # (N,KK,Ho,Wo)
    px = base_x[None, None, None, :] + kw[None, :, None, None] + dx

    xf = x.reshape(N, C, H * W)

    def corner(yy, xx):
        valid = (yy >= 0) & (yy <= H - 1) & (xx >= 0) & (xx <= W - 1)
        yi = jnp.clip(yy, 0, H - 1).astype(jnp.int32)
        xi = jnp.clip(xx, 0, W - 1).astype(jnp.int32)
        flat = (yi * W + xi).reshape(N, KK * Ho * Wo)                  # (N, P)
        vals = jnp.take_along_axis(xf, flat[:, None, :], axis=2)      # (N, C, P)
        vals = vals.reshape(N, C, KK, Ho, Wo)
        return vals * valid[:, None].astype(x.dtype)

    y0 = jnp.floor(py)
    x0 = jnp.floor(px)
    y1, x1 = y0 + 1.0, x0 + 1.0
    wy1, wx1 = py - y0, px - x0
    wy0, wx0 = 1.0 - wy1, 1.0 - wx1

    col = ((wy0 * wx0)[:, None] * corner(y0, x0)
           + (wy0 * wx1)[:, None] * corner(y0, x1)
           + (wy1 * wx0)[:, None] * corner(y1, x0)
           + (wy1 * wx1)[:, None] * corner(y1, x1))                    # (N,C,KK,Ho,Wo)

    cols = col.reshape(N, C * KK, Ho * Wo)
    if out_dtype is not None:
        cols = cols.astype(out_dtype)
    if k_pad_to is not None or hw_pad_to is not None:
        kp = (k_pad_to if k_pad_to is not None else C * KK) - C * KK
        hp = (hw_pad_to if hw_pad_to is not None else Ho * Wo) - Ho * Wo
        cols = jnp.pad(cols, ((0, 0), (0, kp), (0, hp)))
    return cols, Ho, Wo


# ----------------------------------------------------------------------------
# Module wrapper (forward pass): DeformConv2d (no bias) -> GroupNorm -> ReLU.
# ----------------------------------------------------------------------------
def deform_conv2d_module(x, offset, params, *, kernel_size=3, stride=1,
                         padding=1, num_groups=4, eps=1e-5, hw_tile=None,
                         compute_dtype=jnp.bfloat16, prenorm_dtype=jnp.bfloat16):
    N, C_in, H, W = x.shape
    weight = params["weight"]
    C_out = weight.shape[0]
    K = kernel_size
    KK = K * K
    G = num_groups
    assert C_out % G == 0

    Ho, Wo = _conv_out_hw(H, W, K, stride, padding)
    HW = Ho * Wo

    cap = _tpu_vmem_capacity_bytes()
    budget = int(cap * 3 // 4)

    # --- TPU-friendly padded sizes ----------------------------------------
    ckk = C_in * KK
    # MXU contraction alignment: 128 when large, else bf16 sublane packing (16).
    kpad = _round_up(ckk, 128) if ckk >= 128 else _round_up(ckk, 16)
    cpad = _round_up(C_out, 16)
    out_itemsize = jnp.dtype(x.dtype).itemsize

    # Kernel-1 HW tile: auto-sized from the VMEM budget unless overridden.
    if hw_tile is None:
        fixed = 2 * (cpad * kpad * 2) + 2 * (2 * cpad * 128 * 4)
        per_lane = 2 * (kpad * 2 + cpad * 2)            # cols + y, bf16, 2 buffers
        avail = max(int(budget * 0.5) - fixed, 128 * per_lane)
        tile1 = (avail // per_lane) // 128 * 128
        tile1 = max(128, min(tile1, 2048))
    else:
        tile1 = max(128, (hw_tile // 128) * 128)
    tile1 = min(tile1, _round_up(HW, 128))

    hw_pad = _round_up(HW, tile1)
    n_hw = hw_pad // tile1
    # v7x: with N == 1 the batch axis cannot feed both TensorCores; split HW
    # into parallel chunks and reduce per-chunk partial stats in the glue.
    n_chunks = 2 if (N == 1 and n_hw >= 2) else 1
    n_hw = _round_up(n_hw, n_chunks)
    tpc = n_hw // n_chunks
    hw_pad = n_hw * tile1

    # --- im2col emitted once, already bf16 + padded ------------------------
    cols_p, _, _ = deform_im2col(x, offset, K, stride, padding,
                                 out_dtype=compute_dtype,
                                 k_pad_to=kpad, hw_pad_to=hw_pad)
    w_p = jnp.pad(weight.reshape(C_out, ckk),
                  ((0, cpad - C_out), (0, kpad - ckk))).astype(compute_dtype)

    # NOTE: DeformConv2d has no conv bias, so zero-padded spatial columns and
    # zero-padded output channels produce exactly-zero pre-norm values and do
    # not perturb the GroupNorm sums (true HW / C_out counts are used below).

    per_step1 = (2 * (kpad * tile1 * 2)              # cols, double-buffered
                 + 2 * (cpad * tile1 * 2)            # y out (bf16), double-buffered
                 + 2 * (cpad * kpad * 2)             # weight
                 + 2 * (2 * cpad * 128 * 4))         # sum/sq partials
    y_full, sum_p, sq_p = pl.pallas_call(
        _dcn_gemm_stats_kernel,
        out_shape=(jax.ShapeDtypeStruct((N, cpad, hw_pad), prenorm_dtype),
                   jax.ShapeDtypeStruct((N, n_chunks, cpad, 128), jnp.float32),
                   jax.ShapeDtypeStruct((N, n_chunks, cpad, 128), jnp.float32)),
        grid_spec=pltpu.PrefetchScalarGridSpec(
            num_scalar_prefetch=0,
            grid=(N, n_chunks, tpc),
            in_specs=[
                pl.BlockSpec((1, kpad, tile1), lambda n, c, t: (n, 0, c * tpc + t)),
                pl.BlockSpec((cpad, kpad), lambda n, c, t: (0, 0)),
            ],
            out_specs=[
                pl.BlockSpec((1, cpad, tile1), lambda n, c, t: (n, 0, c * tpc + t)),
                pl.BlockSpec((1, 1, cpad, 128), lambda n, c, t: (n, c, 0, 0)),
                pl.BlockSpec((1, 1, cpad, 128), lambda n, c, t: (n, c, 0, 0)),
            ]),
        compiler_params=pltpu.CompilerParams(
            dimension_semantics=("parallel", "parallel", "arbitrary"),
            vmem_limit_bytes=_vmem_limit(per_step1, cap)),
    )(cols_p, w_p)

    # --- tiny GroupNorm statistics -> fused scale/shift (plain JAX) --------
    cpg = C_out // G
    cnt = cpg * HW
    ch_sum = sum_p[:, :, :C_out, :].sum(axis=(1, 3))              # (N, C_out)
    ch_sq = sq_p[:, :, :C_out, :].sum(axis=(1, 3))
    g_sum = ch_sum.reshape(N, G, cpg).sum(-1)                     # (N, G)
    g_sq = ch_sq.reshape(N, G, cpg).sum(-1)
    g_mean = g_sum / cnt
    g_var = jnp.maximum(g_sq / cnt - g_mean * g_mean, 0.0)        # clamp >= 0
    inv = lax.rsqrt(g_var + eps)
    scale = params["gamma"][None, :] * jnp.repeat(inv, cpg, axis=1)
    shift = params["beta"][None, :] - jnp.repeat(g_mean, cpg, axis=1) * scale
    ss = jnp.stack([scale, shift], axis=-1)                       # (N, C_out, 2)
    ss = jnp.pad(ss, ((0, 0), (0, cpad - C_out), (0, 0))).astype(jnp.float32)

    # --- Kernel 2: its own (larger) streaming tile, exact output shape -----
    bytes_per_lane2 = 2 * (cpad * 2 + C_out * out_itemsize)       # in+out, 2 buffers
    cap2 = max(int(budget * 2 // 5), bytes_per_lane2 * tile1)
    m = n_hw
    while m > 1 and (m * tile1 * bytes_per_lane2 > cap2 or m * tile1 > 8192):
        m -= 1
        while n_hw % m:
            m -= 1
    tile2 = m * tile1                                             # divides hw_pad
    n_t2 = pl.cdiv(HW, tile2)

    per_step2 = (2 * (cpad * tile2 * 2) + 2 * (cpad * 2 * 4)
                 + 2 * (C_out * tile2 * out_itemsize))
    out = pl.pallas_call(
        _gn_relu_kernel,
        out_shape=jax.ShapeDtypeStruct((N, C_out, HW), x.dtype),
        grid_spec=pltpu.PrefetchScalarGridSpec(
            num_scalar_prefetch=0,
            grid=(N, n_t2),
            in_specs=[
                pl.BlockSpec((1, cpad, tile2), lambda n, t: (n, 0, t)),
                pl.BlockSpec((1, cpad, 2), lambda n, t: (n, 0, 0)),
            ],
            out_specs=pl.BlockSpec((1, C_out, tile2), lambda n, t: (n, 0, t))),
        compiler_params=pltpu.CompilerParams(
            dimension_semantics=("parallel", "parallel"),
            vmem_limit_bytes=_vmem_limit(per_step2, cap)),
    )(y_full, ss)

    return out.reshape(N, C_out, Ho, Wo)


# ----------------------------------------------------------------------------
# Pure-JAX reference (same sampling glue; dense math in jnp) for sanity check.
# quantize_dtype emulates the kernel's bf16 GEMM inputs (f32 accumulation);
# prenorm_dtype emulates the bf16 pre-norm intermediate (stats stay f32).
# ----------------------------------------------------------------------------
def reference_forward(x, offset, params, *, kernel_size=3, stride=1,
                      padding=1, num_groups=4, eps=1e-5, quantize_dtype=None,
                      prenorm_dtype=None):
    N, C_in, H, W = x.shape
    weight = params["weight"]
    C_out = weight.shape[0]
    K = kernel_size
    KK = K * K
    cols, Ho, Wo = deform_im2col(x, offset, K, stride, padding)
    HW = Ho * Wo
    w2 = weight.reshape(C_out, C_in * KK)
    if quantize_dtype is not None:
        cols = cols.astype(quantize_dtype).astype(jnp.float32)
        w2 = w2.astype(quantize_dtype).astype(jnp.float32)
    y = jnp.einsum("ok,nkp->nop", w2, cols)                       # (N, C_out, HW)
    G = num_groups
    cpg = C_out // G
    yg = y.reshape(N, G, cpg * HW)
    mean = yg.mean(-1)                                            # (N, G)  f32 stats
    var = ((yg - mean[..., None]) ** 2).mean(-1)
    inv = lax.rsqrt(var + eps)
    scale = params["gamma"][None, :] * jnp.repeat(inv, cpg, axis=1)
    shift = params["beta"][None, :] - jnp.repeat(mean, cpg, axis=1) * scale
    y_n = y if prenorm_dtype is None else y.astype(prenorm_dtype).astype(jnp.float32)
    out = jnp.maximum(y_n * scale[:, :, None] + shift[:, :, None], 0.0)
    return out.reshape(N, C_out, Ho, Wo)


if __name__ == "__main__":
    # Small shapes consistent with the module.
    C_in, C_out, H, W, K = 4, 8, 16, 16, 3
    stride, padding, num_groups = 1, 1, 4
    KK = K * K

    key = jax.random.PRNGKey(0)
    k_w = jax.random.fold_in(key, 0)

    # mmcv DeformConv2d.reset_parameters-style uniform weight init (bias=False);
    # GroupNorm constant_init gamma=1, beta=0.
    fan_in = C_in * K * K
    stdv = 1.0 / math.sqrt(fan_in)
    params = {
        "weight": jax.random.uniform(k_w, (C_out, C_in, K, K), jnp.float32,
                                     -stdv, stdv),
        "gamma": jnp.ones((C_out,), jnp.float32),
        "beta": jnp.zeros((C_out,), jnp.float32),
    }

    def run_case(case_id, N, hw_tile):
        k_x, k_off = jax.random.split(jax.random.fold_in(key, 100 + case_id), 2)
        x = jax.random.normal(k_x, (N, C_in, H, W), jnp.float32)
        offset = 0.5 * jax.random.normal(k_off, (N, 2 * KK, H, W), jnp.float32)

        fwd = jax.jit(functools.partial(
            deform_conv2d_module, kernel_size=K, stride=stride, padding=padding,
            num_groups=num_groups, hw_tile=hw_tile))
        out = jax.block_until_ready(fwd(x, offset, params))

        ref = jax.block_until_ready(
            reference_forward(x, offset, params, kernel_size=K, stride=stride,
                              padding=padding, num_groups=num_groups,
                              quantize_dtype=jnp.bfloat16,
                              prenorm_dtype=jnp.bfloat16))

        assert out.shape == (N, C_out, H, W), out.shape
        max_err = float(jnp.max(jnp.abs(out - ref)))
        assert jnp.allclose(out, ref, rtol=2e-3, atol=2e-3), (case_id, max_err)

    # Case 1: multi-tile GroupNorm-stats accumulation path (N=2, tile=128).
    run_case(1, N=2, hw_tile=128)
    # Case 2: N=1 exercises the parallel HW-chunk split (2 chunks x 1 tile).
    run_case(2, N=1, hw_tile=128)
    # Case 3: auto tile sizing from the VMEM budget (single-tile path).
    run_case(3, N=2, hw_tile=None)

    print("KERNEL_OK")
</pallas_src>

<mosaic_0001>
module attributes {stable_mosaic.version = 11 : i64} {
  func.func @_dcn_gemm_stats_kernel(%arg0: i32, %arg1: i32, %arg2: i32, %arg3: memref<1x48x128xbf16, #tpu.memory_space<vmem>>, %arg4: memref<16x48xbf16, #tpu.memory_space<vmem>>, %arg5: memref<1x16x128xbf16, #tpu.memory_space<vmem>>, %arg6: memref<1x1x16x128xf32, #tpu.memory_space<vmem>>, %arg7: memref<1x1x16x128xf32, #tpu.memory_space<vmem>>) attributes {dimension_semantics = [#tpu.dimension_semantics<parallel>, #tpu.dimension_semantics<parallel>, #tpu.dimension_semantics<arbitrary>], iteration_bounds = array<i64: 2, 1, 2>, scalar_prefetch = 0 : i64, scratch_operands = 0 : i64, tpu.core_type = #tpu.core_type<tc>, window_params = [{transform_indices = @transform_0, window_bounds = array<i64: 1, 48, 128>}, {pipeline_mode = #tpu.pipeline_mode<synchronous>, transform_indices = @transform_1, window_bounds = array<i64: 16, 48>}, {transform_indices = @transform_2, window_bounds = array<i64: 1, 16, 128>}, {transform_indices = @transform_3, window_bounds = array<i64: 1, 1, 16, 128>}, {transform_indices = @transform_4, window_bounds = array<i64: 1, 1, 16, 128>}]} {
    %c0_i32 = arith.constant 0 : i32
    %0 = arith.cmpi eq, %arg2, %c0_i32 : i32
    %1 = arith.extui %0 : i1 to i32
    %c0_i32_0 = arith.constant 0 : i32
    %2 = arith.cmpi ne, %1, %c0_i32_0 : i32
    scf.if %2 {
      %cst_26 = arith.constant 0.000000e+00 : f32
      %28 = vector.broadcast %cst_26 : f32 to vector<1x1x16x128xf32>
      %c0_27 = arith.constant 0 : index
      %c0_28 = arith.constant 0 : index
      %c0_29 = arith.constant 0 : index
      %c0_30 = arith.constant 0 : index
      %29 = vector.load %arg6[%c0_27, %c0_28, %c0_29, %c0_30] : memref<1x1x16x128xf32, #tpu.memory_space<vmem>>, vector<1x1x16x128xf32>
      tpu.vector_store %arg6[%c0_27, %c0_28, %c0_29, %c0_30], %28 {strides = array<i32>} : memref<1x1x16x128xf32, #tpu.memory_space<vmem>>, vector<1x1x16x128xf32>,
      %cst_31 = arith.constant 0.000000e+00 : f32
      %30 = vector.broadcast %cst_31 : f32 to vector<1x1x16x128xf32>
      %c0_32 = arith.constant 0 : index
      %c0_33 = arith.constant 0 : index
      %c0_34 = arith.constant 0 : index
      %c0_35 = arith.constant 0 : index
      %31 = vector.load %arg7[%c0_32, %c0_33, %c0_34, %c0_35] : memref<1x1x16x128xf32, #tpu.memory_space<vmem>>, vector<1x1x16x128xf32>
      tpu.vector_store %arg7[%c0_32, %c0_33, %c0_34, %c0_35], %30 {strides = array<i32>} : memref<1x1x16x128xf32, #tpu.memory_space<vmem>>, vector<1x1x16x128xf32>,
    } else {
    }
    %c0 = arith.constant 0 : index
    %c0_1 = arith.constant 0 : index
    %3 = vector.load %arg4[%c0, %c0_1] : memref<16x48xbf16, #tpu.memory_space<vmem>>, vector<16x48xbf16>
    %c0_2 = arith.constant 0 : index
    %c0_3 = arith.constant 0 : index
    %c0_4 = arith.constant 0 : index
    %4 = vector.load %arg3[%c0_2, %c0_3, %c0_4] : memref<1x48x128xbf16, #tpu.memory_space<vmem>>, vector<1x48x128xbf16>
    %5 = vector.shape_cast %4 : vector<1x48x128xbf16> to vector<48x128xbf16>
    %cst = arith.constant dense<0.000000e+00> : vector<16x128xf32>
    %6 = tpu.matmul %3, %5, %cst {dimension_numbers = #tpu.dot_dimension_numbers<[1], [0], [0], [1], [0, 0, 1, 1], [], []>} : vector<16x48xbf16>, vector<48x128xbf16>, vector<16x128xf32> -> vector<16x128xf32>
    %7 = arith.truncf %6 : vector<16x128xf32> to vector<16x128xbf16>
    %c0_5 = arith.constant 0 : index
    %c0_6 = arith.constant 0 : index
    %c0_7 = arith.constant 0 : index
    %8 = vector.load %arg5[%c0_5, %c0_6, %c0_7] : memref<1x16x128xbf16, #tpu.memory_space<vmem>>, vector<1x16x128xbf16>
    %9 = vector.shape_cast %8 : vector<1x16x128xbf16> to vector<16x128xbf16>
    %10 = vector.shape_cast %7 : vector<16x128xbf16> to vector<1x16x128xbf16>
    tpu.vector_store %arg5[%c0_5, %c0_6, %c0_7], %10 {strides = array<i32>} : memref<1x16x128xbf16, #tpu.memory_space<vmem>>, vector<1x16x128xbf16>,
    %cst_8 = arith.constant 0.000000e+00 : f32
    %11 = vector.broadcast %cst_8 : f32 to vector<16x128xf32>
    %cst_9 = arith.constant 0.000000e+00 : f32
    %12 = vector.broadcast %cst_9 : f32 to vector<16x128xf32>
    %13 = arith.addf %11, %6 : vector<16x128xf32>
    %14 = arith.mulf %6, %6 : vector<16x128xf32>
    %15 = arith.addf %12, %14 : vector<16x128xf32>
    %c0_10 = arith.constant 0 : index
    %c0_11 = arith.constant 0 : index
    %c0_12 = arith.constant 0 : index
    %c0_13 = arith.constant 0 : index
    %16 = vector.load %arg6[%c0_10, %c0_11, %c0_12, %c0_13] : memref<1x1x16x128xf32, #tpu.memory_space<vmem>>, vector<1x1x16x128xf32>
    %17 = vector.shape_cast %16 : vector<1x1x16x128xf32> to vector<16x128xf32>
    %18 = arith.addf %17, %13 : vector<16x128xf32>
    %c0_14 = arith.constant 0 : index
    %c0_15 = arith.constant 0 : index
    %c0_16 = arith.constant 0 : index
    %c0_17 = arith.constant 0 : index
    %19 = vector.load %arg6[%c0_14, %c0_15, %c0_16, %c0_17] : memref<1x1x16x128xf32, #tpu.memory_space<vmem>>, vector<1x1x16x128xf32>
    %20 = vector.shape_cast %19 : vector<1x1x16x128xf32> to vector<16x128xf32>
    %21 = vector.shape_cast %18 : vector<16x128xf32> to vector<1x1x16x128xf32>
    tpu.vector_store %arg6[%c0_14, %c0_15, %c0_16, %c0_17], %21 {strides = array<i32>} : memref<1x1x16x128xf32, #tpu.memory_space<vmem>>, vector<1x1x16x128xf32>,
    %c0_18 = arith.constant 0 : index
    %c0_19 = arith.constant 0 : index
    %c0_20 = arith.constant 0 : index
    %c0_21 = arith.constant 0 : index
    %22 = vector.load %arg7[%c0_18, %c0_19, %c0_20, %c0_21] : memref<1x1x16x128xf32, #tpu.memory_space<vmem>>, vector<1x1x16x128xf32>
    %23 = vector.shape_cast %22 : vector<1x1x16x128xf32> to vector<16x128xf32>
    %24 = arith.addf %23, %15 : vector<16x128xf32>
    %c0_22 = arith.constant 0 : index
    %c0_23 = arith.constant 0 : index
    %c0_24 = arith.constant 0 : index
    %c0_25 = arith.constant 0 : index
    %25 = vector.load %arg7[%c0_22, %c0_23, %c0_24, %c0_25] : memref<1x1x16x128xf32, #tpu.memory_space<vmem>>, vector<1x1x16x128xf32>
    %26 = vector.shape_cast %25 : vector<1x1x16x128xf32> to vector<16x128xf32>
    %27 = vector.shape_cast %24 : vector<16x128xf32> to vector<1x1x16x128xf32>
    tpu.vector_store %arg7[%c0_22, %c0_23, %c0_24, %c0_25], %27 {strides = array<i32>} : memref<1x1x16x128xf32, #tpu.memory_space<vmem>>, vector<1x1x16x128xf32>,
    return
  }
  func.func @transform_0(%arg0: i32, %arg1: i32, %arg2: i32) -> (i32, i32, i32) {
    %c2_i32 = arith.constant 2 : i32
    %0 = arith.muli %arg1, %c2_i32 : i32
    %1 = arith.addi %0, %arg2 : i32
    %c0_i32 = arith.constant 0 : i32
    %c0_i32_0 = arith.constant 0 : i32
    return %arg0, %c0_i32, %1 : i32, i32, i32
  }
  func.func @transform_1(%arg0: i32, %arg1: i32, %arg2: i32) -> (i32, i32) {
    %c0_i32 = arith.constant 0 : i32
    %c0_i32_0 = arith.constant 0 : i32
    %c0_i32_1 = arith.constant 0 : i32
    return %c0_i32, %c0_i32_0 : i32, i32
  }
  func.func @transform_2(%arg0: i32, %arg1: i32, %arg2: i32) -> (i32, i32, i32) {
    %c2_i32 = arith.constant 2 : i32
    %0 = arith.muli %arg1, %c2_i32 : i32
    %1 = arith.addi %0, %arg2 : i32
    %c0_i32 = arith.constant 0 : i32
    %c0_i32_0 = arith.constant 0 : i32
    return %arg0, %c0_i32, %1 : i32, i32, i32
  }
  func.func @transform_3(%arg0: i32, %arg1: i32, %arg2: i32) -> (i32, i32, i32, i32) {
    %c0_i32 = arith.constant 0 : i32
    %c0_i32_0 = arith.constant 0 : i32
    %c0_i32_1 = arith.constant 0 : i32
    return %arg0, %arg1, %c0_i32, %c0_i32_0 : i32, i32, i32, i32
  }
  func.func @transform_4(%arg0: i32, %arg1: i32, %arg2: i32) -> (i32, i32, i32, i32) {
    %c0_i32 = arith.constant 0 : i32
    %c0_i32_0 = arith.constant 0 : i32
    %c0_i32_1 = arith.constant 0 : i32
    return %arg0, %arg1, %c0_i32, %c0_i32_0 : i32, i32, i32, i32
  }
}

module attributes {stable_mosaic.version = 11 : i64} {
  func.func @_gn_relu_kernel(%arg0: i32, %arg1: i32, %arg2: memref<1x16x256xbf16, #tpu.memory_space<vmem>>, %arg3: memref<1x16x2xf32, #tpu.memory_space<vmem>>, %arg4: memref<1x8x256xf32, #tpu.memory_space<vmem>>) attributes {dimension_semantics = [#tpu.dimension_semantics<parallel>, #tpu.dimension_semantics<parallel>], iteration_bounds = array<i64: 2, 1>, scalar_prefetch = 0 : i64, scratch_operands = 0 : i64, tpu.core_type = #tpu.core_type<tc>, window_params = [{transform_indices = @transform_0, window_bounds = array<i64: 1, 16, 256>}, {transform_indices = @transform_1, window_bounds = array<i64: 1, 16, 2>}, {transform_indices = @transform_2, window_bounds = array<i64: 1, 8, 256>}]} {
    %c0 = arith.constant 0 : index
    %c0_0 = arith.constant 0 : index
    %c0_1 = arith.constant 0 : index
    %0 = vector.load %arg3[%c0, %c0_0, %c0_1] : memref<1x16x2xf32, #tpu.memory_space<vmem>>, vector<1x16x2xf32>
    %1 = vector.shape_cast %0 : vector<1x16x2xf32> to vector<16x2xf32>
    %2 = vector.extract_strided_slice %1 {offsets = [0, 0], sizes = [16, 1], strides = [1, 1]} : vector<16x2xf32> to vector<16x1xf32>
    %3 = vector.extract_strided_slice %1 {offsets = [0, 1], sizes = [16, 1], strides = [1, 1]} : vector<16x2xf32> to vector<16x1xf32>
    %c0_2 = arith.constant 0 : index
    %c0_3 = arith.constant 0 : index
    %c0_4 = arith.constant 0 : index
    %4 = vector.load %arg2[%c0_2, %c0_3, %c0_4] : memref<1x16x256xbf16, #tpu.memory_space<vmem>>, vector<1x16x256xbf16>
    %5 = vector.shape_cast %4 : vector<1x16x256xbf16> to vector<16x256xbf16>
    %6 = arith.extf %5 : vector<16x256xbf16> to vector<16x256xf32>
    %7 = vector.broadcast %2 : vector<16x1xf32> to vector<16x256xf32>
    %8 = arith.mulf %6, %7 : vector<16x256xf32>
    %9 = vector.broadcast %3 : vector<16x1xf32> to vector<16x256xf32>
    %10 = arith.addf %8, %9 : vector<16x256xf32>
    %cst = arith.constant 0.000000e+00 : f32
    %11 = vector.broadcast %cst : f32 to vector<16x256xf32>
    %12 = arith.maximumf %10, %11 : vector<16x256xf32>
    %13 = vector.extract_strided_slice %12 {offsets = [0, 0], sizes = [8, 256], strides = [1, 1]} : vector<16x256xf32> to vector<8x256xf32>
    %c0_5 = arith.constant 0 : index
    %c0_6 = arith.constant 0 : index
    %c0_7 = arith.constant 0 : index
    %14 = vector.load %arg4[%c0_5, %c0_6, %c0_7] : memref<1x8x256xf32, #tpu.memory_space<vmem>>, vector<1x8x256xf32>
    %15 = vector.shape_cast %14 : vector<1x8x256xf32> to vector<8x256xf32>
    %16 = vector.shape_cast %13 : vector<8x256xf32> to vector<1x8x256xf32>
    tpu.vector_store %arg4[%c0_5, %c0_6, %c0_7], %16 {strides = array<i32>} : memref<1x8x256xf32, #tpu.memory_space<vmem>>, vector<1x8x256xf32>,
    return
  }
  func.func @transform_0(%arg0: i32, %arg1: i32) -> (i32, i32, i32) {
    %c0_i32 = arith.constant 0 : i32
    %c0_i32_0 = arith.constant 0 : i32
    return %arg0, %c0_i32, %arg1 : i32, i32, i32
  }
  func.func @transform_1(%arg0: i32, %arg1: i32) -> (i32, i32, i32) {
    %c0_i32 = arith.constant 0 : i32
    %c0_i32_0 = arith.constant 0 : i32
    %c0_i32_1 = arith.constant 0 : i32
    return %arg0, %c0_i32, %c0_i32_0 : i32, i32, i32
  }
  func.func @transform_2(%arg0: i32, %arg1: i32) -> (i32, i32, i32) {
    %c0_i32 = arith.constant 0 : i32
    %c0_i32_0 = arith.constant 0 : i32
    return %arg0, %c0_i32, %arg1 : i32, i32, i32
  }
}

</mosaic_0001>

<bundles_post_ra>
// kernel: deform_conv2d_module.3
= control target key start
LH: loop header
LB: loop body
LE: loop exit
PB: predicated region body
PF: predicated region fallthrough
CT: control target
= control target key end

     0   :  { %s408_s9 = smov 0   ;;  %s410_s10 = smov 0   ;;  %s444_s0 = inlined_call_operand.vmem [shape: bf16[2,16,256], index: 0, kind: input, shape index: {}]   ;;  %s445_s1 = inlined_call_operand.vmem [shape: f32[2,16,2], index: 1, kind: input, shape index: {}]   ;;  %s446_s2 = inlined_call_operand.vmem [shape: f32[2,8,256], index: 2, kind: output, shape index: {}]  }
   0x1   :  { %s412_s11 = smov 0  }
   0x2 LB: > { %s24_s12 = sadd.s32 1, %s385_s10  ;;  %p327_p0 = scmp.ge.s32.totalorder %s389_s11, 1  ;;  %s389_s11 = sphi %s412_s11, %s12_s11   ;;  %s385_s10 = sphi %s410_s10, %s448_s10   ;;  %s381_s9 = sphi %s408_s9, %s447_s9  }
   0x3   : > { %p26_p1 = scmp.ge.s32.totalorder %s24_s12, 2  ;;  %p143_p2 = scmp.lt.s32.totalorder %s389_s11, 3 }
   0x5   : > { %s450_s12 = smov (%p26_p1, %s24_s12), 0  ;;  %p144_p3 = pnand %p327_p0, %p143_p2 }
   0x6   : > { %p179_p4 = scmp.lt.s32.totalorder (!%p144_p3), %s381_s9, 1  ;;  %v391_v0 = vmov (!%p144_p3), 0   ;;  %v392_v2 = vmov (!%p144_p3), 1  }
   0x7   : > { %147 = sbr.rel (%p144_p3) target bundleno = 156 (0x9c), region = 28  ;;  %365 = vset.pattern.permute.xlu0 (!%p144_p3), %v391_v0 }
   0xe   : > { %s452_s9 = smov (!%p179_p4, %s381_s9), 1 }
   0xf   : > { %s336_s13 = sshll.u32 %s452_s9, 4 }
  0x10   : > { %s192_s16 = scalar_lea.vmem %s445_s1, %s336_s13  ;;  %s186_s19 = scalar_lea.vmem %s444_s0, %s336_s13 }
  0x11   : > { %v203_v1 = vld [vmem:[%s192_s16] sm:$0xff]  ;;  %s201_s22 = scalar_lea.vmem %s446_s2, %s336_s13 }
  0x12   : > { %209 = vperm.xlu0 %365, %v203_v1   ;;  %v204_v3 = vld [vmem:[%s186_s19] sm:$0xff] }
  0x13   : > { %v205_v5 = vunpack.c.l.bf16 %v204_v3  ;;  %v206_v6 = vunpack.c.h.bf16 %v204_v3 }
  0x16   : > { %366 = vset.pattern.permute.xlu0 %v392_v2 }
  0x17   : > { %215 = vperm.xlu0 %366, %v203_v1  }
  0x91   : > { %v210_v4 = vpop.permute.xlu0 %209 }
  0x92   : > { %v212_v7 = vmul.f32 %v210_v4, %v205_v5  ;;  %v213_v8 = vmul.f32 %v210_v4, %v206_v6 }
  0x96   : > { %v216_v9 = vpop.permute.xlu0 %215 }
  0x97   : > { %v218_v10 = vadd.f32 %v216_v9, %v212_v7  ;;  %v219_v11 = vadd.f32 %v216_v9, %v213_v8 }
  0x99   : > { %v220_v12 = vmax.f32 %v218_v10, 0.0  ;;  %v221_v13 = vmax.f32 %v219_v11, 0.0 }
  0x9b   : > { %222 = vst [vmem:[%s201_s22] sm:$0xff] %v220_v12  ;;  %223 = vst [vmem:[%s201_s22 + $0x8] sm:$0xff] %v221_v13 }
  0x9c PF: > { %s12_s11 = sadd.s32 1, %s389_s11   ;;  %s447_s9 = smov %s385_s10 }
  0x9d   : > { %p9_p5 = scmp.ge.s32.totalorder %s12_s11, 4   ;;  %s448_s10 = smov %s450_s12 }
  0x9f   :  { %11 = sbr.rel (!%p9_p5) target bundleno = 2 (0x2), region = 61 }

// kernel: deform_conv2d_module.2
= control target key start
LH: loop header
LB: loop body
LE: loop exit
PB: predicated region body
PF: predicated region fallthrough
CT: control target
= control target key end

     0   :  { %s888_s15 = smov 0   ;;  %s890_s16 = smov 0   ;;  %s1017_s0 = inlined_call_operand.vmem [shape: bf16[2,48,256], index: 0, kind: input, shape index: {}]   ;;  %s1018_s1 = inlined_call_operand.vmem [shape: bf16[16,48], index: 1, kind: input, shape index: {}]   ;;  %s1019_s2 = inlined_call_operand.vmem [shape: bf16[2,16,256], index: 2, kind: output, shape index: {0}]   ;;  %s1020_s3 = inlined_call_operand.vmem [shape: f32[2,1,16,128], index: 3, kind: output, shape index: {1}]   ;;  %s1021_s4 = inlined_call_operand.vmem [shape: f32[2,1,16,128], index: 4, kind: output, shape index: {2}]  }
   0x1   :  { %s892_s17 = smov 0   ;;  %s894_s18 = smov 0  }
   0x2   :  { %s896_s19 = smov 0   ;;  %s898_s20 = smov 0  }
   0x3   :  { %s900_s21 = smov 0  }
   0x4 LB: > { %s27_s22 = sadd.s32 1, %s850_s19  ;;  %s34_s23 = sadd.s32 1, %s854_s20  ;;  %s858_s21 = sphi %s900_s21, %s15_s21   ;;  %s854_s20 = sphi %s898_s20, %s1028_s20   ;;  %s850_s19 = sphi %s896_s19, %s1027_s19   ;;  %s846_s18 = sphi %s894_s18, %s1026_s18   ;;  %s842_s17 = sphi %s892_s17, %s1025_s17   ;;  %s838_s16 = sphi %s890_s16, %s1024_s16   ;;  %s834_s15 = sphi %s888_s15, %s1023_s15  }
   0x5   : > { %p28_p0 = scmp.ge.s32.totalorder %s27_s22, 2  ;;  %s691_s24 = sadd.s32 4294967295, %s858_s21  }
   0x6   : > { %p54_p1 = scmp.ne.s32.totalorder %s838_s16, %s834_s15  ;;  %p55_p2 = scmp.eq.s32.totalorder %s858_s21, 0 }
   0x7   : > { %s1030_s22 = smov (%p28_p0, %s27_s22), 0  ;;  %s1032_s23 = smov (!%p28_p0, %s34_s23), %s854_s20 }
   0x8   : > { %p36_p3 = scmp.ge.s32.totalorder %s1032_s23, 2  ;;  %p111_p4 = scmp.eq.s32.totalorder %s691_s24, 3 }
   0x9   : > { %s43_s25 = ssub.s32 %s850_s19, %s1030_s22  ;;  %p56_p5 = por %p55_p2, %p54_p1 }
   0xa   : > { %s1034_s23 = smov (%p36_p3, %s1032_s23), 0  ;;  %p936_p6 = por %p111_p4, %p54_p1 }
   0xb   : > { %s42_s27 = ssub.s32 %s854_s20, %s1034_s23  ;;  %s47_s29 = sadd.s32 1, %s838_s16 }
   0xc   : > { %s44_s28 = sor.u32 %s43_s25, %s42_s27  ;;  %p694_p8 = scmp.ge.s32.totalorder %s858_s21, 4 }
   0xd   : > { %p45_p7 = scmp.eq.s32.totalorder %s44_s28, 0 }
   0xe   : > { %192 = sbr.rel (%p694_p8) target bundleno = 32 (0x20), region = 20 }
   0xf   : > { %s944_s30 = scalar_select %p45_p7, %s838_s16, %s47_s29  }
  0x15   : > { %195 = sbr.rel (!%p56_p5) target bundleno = 32 (0x20), region = 24  ;;  %s197_s5 = sand.u32 (%p56_p5), 1, %s838_s16  }
  0x16   : > { %s739_s6 = smul.u32 (%p56_p5), 12, %s854_s20 }
  0x17   : > { %s738_s7 = smul.u32 (%p56_p5), 24, %s197_s5 }
  0x18   : > { %s203_s8 = sadd.s32 (%p56_p5), %s850_s19, %s739_s6 }
  0x19   : > { %s695_s9 = sshll.u32 (%p56_p5), %s203_s8, 2  ;;  %s199_s13 = scalar_lea.vmem (%p56_p5), [#allocation2], %s738_s7 }
  0x1a   : > { %s205_s12 = scalar_lea.vmem (%p56_p5), %s1017_s0, %s695_s9 }
  0x1b   : > { %v221_v0 = vld [vmem:[%s205_s12] sm:$0xf] (%p56_p5)  ;;  %v223_v1 = vld [vmem:[%s205_s12 + $0x8] sm:$0xf] (%p56_p5)  ;;  %v225_v2 = vld [vmem:[%s205_s12 + $0x10] sm:$0xf] (%p56_p5) }
  0x1c   : > { %222 = vst [vmem:[%s199_s13] sm:$0xf] %v221_v0  ;;  %224 = vst [vmem:[%s199_s13 + $0x4] sm:$0xf] %v223_v1  ;;  %v227_v3 = vld [vmem:[%s205_s12 + $0x18] sm:$0xf] }
  0x1d   : > { %226 = vst [vmem:[%s199_s13 + $0x8] sm:$0xf] %v225_v2  ;;  %v229_v4 = vld [vmem:[%s205_s12 + $0x20] sm:$0xf]  ;;  %v231_v5 = vld [vmem:[%s205_s12 + $0x28] sm:$0xf] }
  0x1e   : > { %228 = vst [vmem:[%s199_s13 + $0xc] sm:$0xf] %v227_v3  ;;  %230 = vst [vmem:[%s199_s13 + $0x10] sm:$0xf] %v229_v4 }
  0x1f   : > { %232 = vst [vmem:[%s199_s13 + $0x14] sm:$0xf] %v231_v5 }
  0x20 PF: > { %p696_p9 = scmp.ge.s32.totalorder %s858_s21, 1  ;;  %p266_p10 = scmp.lt.s32.totalorder %s858_s21, 5 }
  0x22   : > { %p267_p11 = pnand %p696_p9, %p266_p10 }
  0x23   : > { %s273_s14 = sand.u32 (!%p267_p11), 1, %s834_s15   ;;  %p319_p12 = scmp.lt.s32.totalorder (!%p267_p11), %s846_s18, 1 }
  0x24   : > { %270 = sbr.rel (%p267_p11) target bundleno = 289 (0x121), region = 65  ;;  %s697_s25 = sshll.u32 (!%p267_p11), %s273_s14, 3 }
  0x25   : > { %s740_s24 = smul.u32 (!%p267_p11), 24, %s273_s14  ;;  %s968_s11 = scalar_lea.vmem (!%p267_p11), [#allocation3], %s697_s25 }
  0x26   : > { %p702_p13 = scmp.ne.s32.totalorder (!%p267_p11), %s842_s17, 0 }
  0x27   : > { %s275_s10 = scalar_lea.vmem (!%p267_p11), [#allocation2], %s740_s24 }
  0x2b   : > { %s320_s27 = scalar_select %p319_p12, %s846_s18, 1 }
  0x2c   : > { %341 = sbr.rel (%p702_p13) target bundleno = 51 (0x33), region = 73  ;;  %v860_v6 = vmov (!%p702_p13), 0.0  }
  0x2d   : > { %s715_s28 = sshll.u32 %s320_s27, 4 }
  0x2e   : > { %s961_s6 = scalar_lea.vmem %s1020_s3, %s715_s28  ;;  %s966_s9 = scalar_lea.vmem %s1021_s4, %s715_s28 }
  0x2f   : > { %342 = vst [vmem:[%s961_s6] sm:$0xff] (!%p702_p13), %v860_v6  ;;  %343 = vst [vmem:[%s961_s6 + $0x8] sm:$0xff] (!%p702_p13), %v860_v6 }
  0x30   : > { %344 = vst [vmem:[%s966_s9] sm:$0xff] (!%p702_p13), %v860_v6  ;;  %345 = vst [vmem:[%s966_s9 + $0x8] sm:$0xff] (!%p702_p13), %v860_v6 }
  0x33 PF: > { %v800_v7 = vld [vmem:[%s275_s10] sm:$0xff]   ;;  %v861_v8 = vmov 0.0   ;;  %v801_v9 = vld [vmem:[%s275_s10 + $0x8] sm:$0xff]   ;;  %vm862_vm0 = vmmov 0   ;;  %v802_v10 = vld [vmem:[%s275_s10 + $0x10] sm:$0xff]   ;;  %vm377_vm1 = vcmask 392192  }
  0x34   : > { %728 = vmatprep.subr.bf16.mxu0 %v861_v8  ;;  %734 = vmatprep.mubr.msk.bf16.mxu0 %vm862_vm0, %v861_v8  ;;  %v803_v11 = vld [vmem:[%s1018_s1] sm:$0xff]   ;;  %s711_s13 = sshll.u32 (%p936_p6), %s846_s18, 2 }
  0x35   : > { %729 = vmatpush3.bf16.msra.mxu0 %v800_v7  ;;  %s478_s14 = sadd.s32 (%p936_p6), %s842_s17, %s711_s13 }
  0x36   : > { %730 = vmatprep.subr.bf16.mxu0 %v861_v8  ;;  %v438_v12 = vld [vmem:[%s961_s6] sm:$0xff]  ;;  %v439_v15 = vld [vmem:[%s961_s6 + $0x8] sm:$0xff]  ;;  %s712_s24 = sshll.u32 (%p936_p6), %s478_s14, 2 }
  0x37   : > { %v444_v14 = vld [vmem:[%s966_s9] sm:$0xff]  ;;  %v445_v20 = vld [vmem:[%s966_s9 + $0x8] sm:$0xff]  ;;  %s480_s28 = scalar_lea.vmem (%p936_p6), %s1019_s2, %s712_s24 }
  0x39   : > { %731 = vmatpush3.bf16.msra.mxu0 %v801_v9 }
  0x3a   : > { %732 = vmatprep.subr.bf16.mxu0 %v861_v8 }
  0x3d   : > { %733 = vmatpush3.bf16.msra.mxu0 %v802_v10 }
  0x40   : > { %735 = vmatmul.mubr.msk.bf16.vlgmr.msra.gmra.mrb[0].mxu0 %vm377_vm1, %v803_v11 }
 0x113   : > { %v415_v13 = vpop.f32.mrb[0].mxu0 }
 0x114   : > { %v434_v16 = vmul.f32 %v415_v13, %v415_v13  ;;  %v440_v17 = vadd.f32 %v438_v12, %v415_v13  ;;  %v736_v18 = vpop.f32.mrb[1].mxu0  ;;  %474 = sbr.rel (!%p936_p6) target bundleno = 289 (0x121), region = 77 }
 0x115   : > { %v418_v19 = vpop.f32.mrb[2].mxu0 }
 0x116   : > { %442 = vst [vmem:[%s961_s6] sm:$0xff] %v440_v17  ;;  %v446_v21 = vadd.f32 %v444_v14, %v434_v16  ;;  %v722_v22 = vpack.c.bf16 %v418_v19, %v415_v13  ;;  %v435_v23 = vmul.f32 %v418_v19, %v418_v19  ;;  %v441_v24 = vadd.f32 %v439_v15, %v418_v19  ;;  %v737_v25 = vpop.f32.mrb[3].mxu0 }
 0x118   : > { %448 = vst [vmem:[%s966_s9] sm:$0xff] %v446_v21  ;;  %723 = vst [vmem:[%s968_s11] sm:$0xff] %v722_v22   ;;  %v447_v26 = vadd.f32 %v445_v20, %v435_v23 }
 0x119   : > { %443 = vst [vmem:[%s961_s6 + $0x8] sm:$0xff] %v441_v24 }
 0x11a   : > { %449 = vst [vmem:[%s966_s9 + $0x8] sm:$0xff] %v447_v26 }
 0x11f   : > { %v496_v27 = vld [vmem:[%s968_s11] sm:$0xf]  ;;  %v498_v28 = vld [vmem:[%s968_s11 + $0x4] sm:$0xf] }
 0x120   : > { %497 = vst [vmem:[%s480_s28] sm:$0xf] %v496_v27  ;;  %499 = vst [vmem:[%s480_s28 + $0x8] sm:$0xf] %v498_v28 }
 0x121 PF: > { %s15_s21 = sadd.s32 1, %s858_s21   ;;  %s1023_s15 = smov %s838_s16 }
 0x122   : > { %p12_p0 = scmp.ge.s32.totalorder %s15_s21, 6   ;;  %s1024_s16 = smov %s944_s30 }
 0x123   : > { %s1025_s17 = smov %s850_s19  ;;  %s1026_s18 = smov %s854_s20 }
 0x124   : > { %s1027_s19 = smov %s1030_s22  ;;  %s1028_s20 = smov %s1034_s23 }
 0x125   :  { %14 = sbr.rel (!%p12_p0) target bundleno = 4 (0x4), region = 173 }

</bundles_post_ra>
